<compile_context>
chip_gen: v6e
topology: v6e:2x2x1
jax: 0.10.0
libtpu: 0.0.40
codegen_flags: <defaults>
</compile_context>

<pallas_src>
import jax
import jax.numpy as jnp
from jax.experimental import pallas as pl
from jax.experimental.pallas import tpu as pltpu


# ---------------------------------------------------------------------------
# Kernel: one Q branch per grid step.
# ---------------------------------------------------------------------------
def critic_kernel(s_ref, a_ref, ws_ref, wa_ref, b1_ref, w2_ref, b2_ref,
                  wq_ref, bq_ref, q_ref):
    # Layer 1 (split-K, avoids materializing concat([state, action_flat])):
    #   h = relu(state @ W1_s + act @ W1_a + b1)      (bf16 MXU, f32 accum)
    s_bf = s_ref[...].astype(jnp.bfloat16)
    a_bf = a_ref[...].astype(jnp.bfloat16)
    h = (jnp.dot(s_bf, ws_ref[...], preferred_element_type=jnp.float32)
         + jnp.dot(a_bf, wa_ref[...], preferred_element_type=jnp.float32)
         + b1_ref[...])
    h = jnp.maximum(h, 0.0)

    # Layer 2 + residual: h = relu(h @ W2 + b2) + h   (matches PyTorch forward)
    h2 = jnp.dot(h.astype(jnp.bfloat16), w2_ref[...],
                 preferred_element_type=jnp.float32) + b2_ref[...]
    h = jnp.maximum(h2, 0.0) + h

    # Fused l3+l4 (linear-linear, no nonlinearity between):
    #   q = h @ (W3 @ W4) + (b3 @ W4 + b4)
    # Effective weight is one (1, 512) row -> elementwise mul + lane reduce
    # (avoids a degenerate N=1 MXU matmul; reduction runs on the XLU).
    q = jnp.sum(h * wq_ref[...].astype(jnp.float32), axis=-1, keepdims=True) \
        + bq_ref[...]
    q_ref[...] = q.astype(q_ref.dtype)


# ---------------------------------------------------------------------------
# Parameter construction (PyTorch Linear-style init, (in, out) layout).
# ---------------------------------------------------------------------------
def init_params(key, state_dim, action_seq_dim):
    D = state_dim + action_seq_dim
    dims = [(D, 512), (512, 512), (512, 256), (256, 1)] * 2
    params = []
    for fan_in, fan_out in dims:
        key, kw, kb = jax.random.split(key, 3)
        bound = 1.0 / float(fan_in) ** 0.5
        w = jax.random.uniform(kw, (fan_in, fan_out), jnp.float32, -bound, bound)
        b = jax.random.uniform(kb, (1, fan_out), jnp.float32, -bound, bound)
        params += [w, b]
    return tuple(params)


def prepare_kernel_params(params, state_dim, weight_dtype=jnp.bfloat16):
    """One-time (cached) transform of the nn.Module weights into the kernel
    layout: split first-layer weight, fuse l3/l4 (in f32), stack per branch,
    cast matmul weights to bf16 (biases stay f32)."""
    (w1, b1, w2, b2, w3, b3, w4, b4,
     w5, b5, w6, b6, w7, b7, w8, b8) = params

    def branch(wA, bA, wB, bB, wC, bC, wD, bD):
        w_s = wA[:state_dim]            # (state_dim, 512)
        w_a = wA[state_dim:]            # (act_dim,   512)
        w_q = (wC @ wD).T               # (1, 512)  fused l3->l4 weight (f32 fuse)
        b_q = bC @ wD + bD              # (1, 1)    fused bias
        return w_s, w_a, bA, wB, bB, w_q, b_q

    br = [branch(w1, b1, w2, b2, w3, b3, w4, b4),
          branch(w5, b5, w6, b6, w7, b7, w8, b8)]

    ws  = jnp.stack([br[0][0], br[1][0]]).astype(weight_dtype)   # (2, S,   512)
    wa  = jnp.stack([br[0][1], br[1][1]]).astype(weight_dtype)   # (2, A,   512)
    b1s = jnp.stack([br[0][2], br[1][2]]).astype(jnp.float32)    # (2, 1,   512)
    w2s = jnp.stack([br[0][3], br[1][3]]).astype(weight_dtype)   # (2, 512, 512)
    b2s = jnp.stack([br[0][4], br[1][4]]).astype(jnp.float32)    # (2, 1,   512)
    wqs = jnp.stack([br[0][5], br[1][5]]).astype(weight_dtype)   # (2, 1,   512)
    bqs = jnp.stack([br[0][6], br[1][6]]).astype(jnp.float32)    # (2, 1,   1)
    return ws, wa, b1s, w2s, b2s, wqs, bqs


# ---------------------------------------------------------------------------
# Pallas wrapper.
# ---------------------------------------------------------------------------
def critic_forward(state, action_seq, kparams):
    B = state.shape[0]
    s = state.astype(jnp.float32)
    a = action_seq.reshape(B, -1).astype(jnp.float32)
    S, A = s.shape[1], a.shape[1]
    ws, wa, b1s, w2s, b2s, wqs, bqs = kparams

    def shared(shape):            # same block for both branches
        return pl.BlockSpec(shape, lambda b: (0, 0))

    def per_branch(shape):        # branch-indexed, leading dim squeezed away
        return pl.BlockSpec((None,) + shape, lambda b: (b, 0, 0))

    flops = 2 * B * ((S + A) * 512 + 512 * 512 + 512) * 2
    bytes_accessed = sum(int(x.size) * x.dtype.itemsize
                         for x in (s, a, ws, wa, b1s, w2s, b2s, wqs, bqs))
    bytes_accessed += 2 * B * 4  # outputs

    out = pl.pallas_call(
        critic_kernel,
        out_shape=jax.ShapeDtypeStruct((2, B, 1), jnp.float32),
        grid=(2,),                                # one Q branch per grid step
        in_specs=[
            shared((B, S)),                       # state               (f32)
            shared((B, A)),                       # flattened action    (f32)
            per_branch((S, 512)),                 # W1_state / W5_state (bf16)
            per_branch((A, 512)),                 # W1_act   / W5_act   (bf16)
            per_branch((1, 512)),                 # b1 / b5             (f32)
            per_branch((512, 512)),               # W2 / W6             (bf16)
            per_branch((1, 512)),                 # b2 / b6             (f32)
            per_branch((1, 512)),                 # fused W3@W4 / W7@W8 (bf16)
            per_branch((1, 1)),                   # fused bias          (f32)
        ],
        out_specs=pl.BlockSpec((None, B, 1), lambda b: (b, 0, 0)),
        compiler_params=pltpu.CompilerParams(
            dimension_semantics=("parallel",)),   # v7x: one branch per TC
        cost_estimate=pl.CostEstimate(
            flops=flops, transcendentals=0, bytes_accessed=bytes_accessed),
    )(s, a, ws, wa, b1s, w2s, b2s, wqs, bqs)
    return out[0], out[1]


# ---------------------------------------------------------------------------
# References.
# ---------------------------------------------------------------------------
def critic_ref(state, action_seq, params):
    """Pure-JAX f32 reference of the PyTorch forward (unfused, f32 weights)."""
    B = state.shape[0]
    x = jnp.concatenate([state, action_seq.reshape(B, -1)], axis=1).astype(jnp.float32)
    (w1, b1, w2, b2, w3, b3, w4, b4,
     w5, b5, w6, b6, w7, b7, w8, b8) = params

    def branch(wA, bA, wB, bB, wC, bC, wD, bD):
        h = jax.nn.relu(x @ wA + bA)
        h = jax.nn.relu(h @ wB + bB) + h
        h = h @ wC + bC
        return h @ wD + bD

    return (branch(w1, b1, w2, b2, w3, b3, w4, b4),
            branch(w5, b5, w6, b6, w7, b7, w8, b8))


def critic_ref_prepared(state, action_seq, kparams):
    """Plain-JAX mirror of the exact kernel math (fused l3/l4, bf16 matmuls)."""
    B = state.shape[0]
    s = state.astype(jnp.float32)
    a = action_seq.reshape(B, -1).astype(jnp.float32)
    ws, wa, b1s, w2s, b2s, wqs, bqs = kparams
    qs = []
    for b in range(2):
        h = (jnp.dot(s.astype(jnp.bfloat16), ws[b],
                     preferred_element_type=jnp.float32)
             + jnp.dot(a.astype(jnp.bfloat16), wa[b],
                       preferred_element_type=jnp.float32) + b1s[b])
        h = jax.nn.relu(h)
        h2 = jnp.dot(h.astype(jnp.bfloat16), w2s[b],
                     preferred_element_type=jnp.float32) + b2s[b]
        h = jax.nn.relu(h2) + h
        q = jnp.sum(h * wqs[b].astype(jnp.float32), axis=-1, keepdims=True) + bqs[b]
        qs.append(q)
    return qs[0], qs[1]


if __name__ == "__main__":
    # small shapes consistent with the module
    B = 2
    state_dim = 12
    T, A = 8, 4                       # action sequence: (B, T, A) -> flat dim 32
    action_seq_dim = T * A

    key = jax.random.PRNGKey(0)
    k_s, k_a, k_p = jax.random.split(key, 3)

    state = jax.random.normal(k_s, (B, state_dim), jnp.float32)
    action_seq = jax.random.normal(k_a, (B, T, A), jnp.float32)

    params = init_params(k_p, state_dim, action_seq_dim)
    kparams = prepare_kernel_params(params, state_dim)   # fused + bf16, done once

    fwd = jax.jit(critic_forward)
    q1, q2 = fwd(state, action_seq, kparams)
    jax.block_until_ready((q1, q2))

    assert q1.shape == (B, 1) and q2.shape == (B, 1)

    # 1) exact-math check: same fused/bf16 computation in plain JAX
    r1p, r2p = critic_ref_prepared(state, action_seq, kparams)
    assert jnp.allclose(q1, r1p, atol=1e-2, rtol=1e-2), float(jnp.max(jnp.abs(q1 - r1p)))
    assert jnp.allclose(q2, r2p, atol=1e-2, rtol=1e-2), float(jnp.max(jnp.abs(q2 - r2p)))

    # 2) semantic check vs the full-f32, unfused PyTorch-style forward
    #    (looser tolerance to absorb bf16 weight/activation quantization)
    r1, r2 = critic_ref(state, action_seq, params)
    assert jnp.allclose(q1, r1, atol=3e-2, rtol=3e-2), float(jnp.max(jnp.abs(q1 - r1)))
    assert jnp.allclose(q2, r2, atol=3e-2, rtol=3e-2), float(jnp.max(jnp.abs(q2 - r2)))

    print("KERNEL_OK")
</pallas_src>

<mosaic_0001>
module attributes {stable_mosaic.version = 11 : i64} {
  func.func @critic_kernel(%arg0: i32, %arg1: memref<2x12xf32, #tpu.memory_space<vmem>>, %arg2: memref<2x32xf32, #tpu.memory_space<vmem>>, %arg3: memref<1x12x512xbf16, #tpu.memory_space<vmem>>, %arg4: memref<1x32x512xbf16, #tpu.memory_space<vmem>>, %arg5: memref<1x1x512xf32, #tpu.memory_space<vmem>>, %arg6: memref<1x512x512xbf16, #tpu.memory_space<vmem>>, %arg7: memref<1x1x512xf32, #tpu.memory_space<vmem>>, %arg8: memref<1x1x512xbf16, #tpu.memory_space<vmem>>, %arg9: memref<1x1x1xf32, #tpu.memory_space<vmem>>, %arg10: memref<1x2x1xf32, #tpu.memory_space<vmem>>) attributes {dimension_semantics = [#tpu.dimension_semantics<parallel>], iteration_bounds = array<i64: 2>, scalar_prefetch = 0 : i64, scratch_operands = 0 : i64, tpu.core_type = #tpu.core_type<tc>, window_params = [{pipeline_mode = #tpu.pipeline_mode<synchronous>, transform_indices = @transform_0, window_bounds = array<i64: 2, 12>}, {pipeline_mode = #tpu.pipeline_mode<synchronous>, transform_indices = @transform_1, window_bounds = array<i64: 2, 32>}, {transform_indices = @transform_2, window_bounds = array<i64: 1, 12, 512>}, {transform_indices = @transform_3, window_bounds = array<i64: 1, 32, 512>}, {transform_indices = @transform_4, window_bounds = array<i64: 1, 1, 512>}, {transform_indices = @transform_5, window_bounds = array<i64: 1, 512, 512>}, {transform_indices = @transform_6, window_bounds = array<i64: 1, 1, 512>}, {transform_indices = @transform_7, window_bounds = array<i64: 1, 1, 512>}, {transform_indices = @transform_8, window_bounds = array<i64: 1, 1, 1>}, {transform_indices = @transform_9, window_bounds = array<i64: 1, 2, 1>}]} {
    %c0 = arith.constant 0 : index
    %c0_0 = arith.constant 0 : index
    %0 = vector.load %arg1[%c0, %c0_0] : memref<2x12xf32, #tpu.memory_space<vmem>>, vector<2x12xf32>
    %1 = arith.truncf %0 : vector<2x12xf32> to vector<2x12xbf16>
    %c0_1 = arith.constant 0 : index
    %c0_2 = arith.constant 0 : index
    %2 = vector.load %arg2[%c0_1, %c0_2] : memref<2x32xf32, #tpu.memory_space<vmem>>, vector<2x32xf32>
    %3 = arith.truncf %2 : vector<2x32xf32> to vector<2x32xbf16>
    %c0_3 = arith.constant 0 : index
    %c0_4 = arith.constant 0 : index
    %c0_5 = arith.constant 0 : index
    %4 = vector.load %arg3[%c0_3, %c0_4, %c0_5] : memref<1x12x512xbf16, #tpu.memory_space<vmem>>, vector<1x12x512xbf16>
    %5 = vector.shape_cast %4 : vector<1x12x512xbf16> to vector<12x512xbf16>
    %cst = arith.constant dense<0.000000e+00> : vector<2x512xf32>
    %6 = tpu.matmul %1, %5, %cst {dimension_numbers = #tpu.dot_dimension_numbers<[1], [0], [0], [1], [0, 0, 1, 1], [], []>} : vector<2x12xbf16>, vector<12x512xbf16>, vector<2x512xf32> -> vector<2x512xf32>
    %c0_6 = arith.constant 0 : index
    %c0_7 = arith.constant 0 : index
    %c0_8 = arith.constant 0 : index
    %7 = vector.load %arg4[%c0_6, %c0_7, %c0_8] : memref<1x32x512xbf16, #tpu.memory_space<vmem>>, vector<1x32x512xbf16>
    %8 = vector.shape_cast %7 : vector<1x32x512xbf16> to vector<32x512xbf16>
    %cst_9 = arith.constant dense<0.000000e+00> : vector<2x512xf32>
    %9 = tpu.matmul %3, %8, %cst_9 {dimension_numbers = #tpu.dot_dimension_numbers<[1], [0], [0], [1], [0, 0, 1, 1], [], []>} : vector<2x32xbf16>, vector<32x512xbf16>, vector<2x512xf32> -> vector<2x512xf32>
    %10 = arith.addf %6, %9 : vector<2x512xf32>
    %c0_10 = arith.constant 0 : index
    %c0_11 = arith.constant 0 : index
    %c0_12 = arith.constant 0 : index
    %11 = vector.load %arg5[%c0_10, %c0_11, %c0_12] : memref<1x1x512xf32, #tpu.memory_space<vmem>>, vector<1x1x512xf32>
    %12 = vector.shape_cast %11 : vector<1x1x512xf32> to vector<1x512xf32>
    %13 = vector.broadcast %12 : vector<1x512xf32> to vector<2x512xf32>
    %14 = arith.addf %10, %13 : vector<2x512xf32>
    %cst_13 = arith.constant 0.000000e+00 : f32
    %15 = vector.broadcast %cst_13 : f32 to vector<2x512xf32>
    %16 = arith.maximumf %14, %15 : vector<2x512xf32>
    %17 = arith.truncf %16 : vector<2x512xf32> to vector<2x512xbf16>
    %c0_14 = arith.constant 0 : index
    %c0_15 = arith.constant 0 : index
    %c0_16 = arith.constant 0 : index
    %18 = vector.load %arg6[%c0_14, %c0_15, %c0_16] : memref<1x512x512xbf16, #tpu.memory_space<vmem>>, vector<1x512x512xbf16>
    %19 = vector.shape_cast %18 : vector<1x512x512xbf16> to vector<512x512xbf16>
    %cst_17 = arith.constant dense<0.000000e+00> : vector<2x512xf32>
    %20 = tpu.matmul %17, %19, %cst_17 {dimension_numbers = #tpu.dot_dimension_numbers<[1], [0], [0], [1], [0, 0, 1, 1], [], []>} : vector<2x512xbf16>, vector<512x512xbf16>, vector<2x512xf32> -> vector<2x512xf32>
    %c0_18 = arith.constant 0 : index
    %c0_19 = arith.constant 0 : index
    %c0_20 = arith.constant 0 : index
    %21 = vector.load %arg7[%c0_18, %c0_19, %c0_20] : memref<1x1x512xf32, #tpu.memory_space<vmem>>, vector<1x1x512xf32>
    %22 = vector.shape_cast %21 : vector<1x1x512xf32> to vector<1x512xf32>
    %23 = vector.broadcast %22 : vector<1x512xf32> to vector<2x512xf32>
    %24 = arith.addf %20, %23 : vector<2x512xf32>
    %cst_21 = arith.constant 0.000000e+00 : f32
    %25 = vector.broadcast %cst_21 : f32 to vector<2x512xf32>
    %26 = arith.maximumf %24, %25 : vector<2x512xf32>
    %27 = arith.addf %26, %16 : vector<2x512xf32>
    %c0_22 = arith.constant 0 : index
    %c0_23 = arith.constant 0 : index
    %c0_24 = arith.constant 0 : index
    %28 = vector.load %arg8[%c0_22, %c0_23, %c0_24] : memref<1x1x512xbf16, #tpu.memory_space<vmem>>, vector<1x1x512xbf16>
    %29 = vector.shape_cast %28 : vector<1x1x512xbf16> to vector<1x512xbf16>
    %30 = arith.extf %29 : vector<1x512xbf16> to vector<1x512xf32>
    %31 = vector.broadcast %30 : vector<1x512xf32> to vector<2x512xf32>
    %32 = arith.mulf %27, %31 : vector<2x512xf32>
    %cst_25 = arith.constant dense<0.000000e+00> : vector<2xf32>
    %33 = vector.multi_reduction <add>, %32, %cst_25 [1] : vector<2x512xf32> to vector<2xf32>
    %34 = vector.shape_cast %33 : vector<2xf32> to vector<2x1xf32>
    %c0_26 = arith.constant 0 : index
    %c0_27 = arith.constant 0 : index
    %c0_28 = arith.constant 0 : index
    %35 = vector.load %arg9[%c0_26, %c0_27, %c0_28] : memref<1x1x1xf32, #tpu.memory_space<vmem>>, vector<1x1x1xf32>
    %36 = vector.shape_cast %35 : vector<1x1x1xf32> to vector<1x1xf32>
    %37 = vector.broadcast %36 : vector<1x1xf32> to vector<2x1xf32>
    %38 = arith.addf %34, %37 : vector<2x1xf32>
    %c0_29 = arith.constant 0 : index
    %c0_30 = arith.constant 0 : index
    %c0_31 = arith.constant 0 : index
    %39 = vector.load %arg10[%c0_29, %c0_30, %c0_31] : memref<1x2x1xf32, #tpu.memory_space<vmem>>, vector<1x2x1xf32>
    %40 = vector.shape_cast %39 : vector<1x2x1xf32> to vector<2x1xf32>
    %41 = vector.shape_cast %38 : vector<2x1xf32> to vector<1x2x1xf32>
    tpu.vector_store %arg10[%c0_29, %c0_30, %c0_31], %41 {strides = array<i32>} : memref<1x2x1xf32, #tpu.memory_space<vmem>>, vector<1x2x1xf32>,
    return
  }
  func.func @transform_0(%arg0: i32) -> (i32, i32) {
    %c0_i32 = arith.constant 0 : i32
    %c0_i32_0 = arith.constant 0 : i32
    %c0_i32_1 = arith.constant 0 : i32
    return %c0_i32, %c0_i32_0 : i32, i32
  }
  func.func @transform_1(%arg0: i32) -> (i32, i32) {
    %c0_i32 = arith.constant 0 : i32
    %c0_i32_0 = arith.constant 0 : i32
    %c0_i32_1 = arith.constant 0 : i32
    return %c0_i32, %c0_i32_0 : i32, i32
  }
  func.func @transform_2(%arg0: i32) -> (i32, i32, i32) {
    %c0_i32 = arith.constant 0 : i32
    %c0_i32_0 = arith.constant 0 : i32
    %c0_i32_1 = arith.constant 0 : i32
    return %arg0, %c0_i32, %c0_i32_0 : i32, i32, i32
  }
  func.func @transform_3(%arg0: i32) -> (i32, i32, i32) {
    %c0_i32 = arith.constant 0 : i32
    %c0_i32_0 = arith.constant 0 : i32
    %c0_i32_1 = arith.constant 0 : i32
    return %arg0, %c0_i32, %c0_i32_0 : i32, i32, i32
  }
  func.func @transform_4(%arg0: i32) -> (i32, i32, i32) {
    %c0_i32 = arith.constant 0 : i32
    %c0_i32_0 = arith.constant 0 : i32
    %c0_i32_1 = arith.constant 0 : i32
    return %arg0, %c0_i32, %c0_i32_0 : i32, i32, i32
  }
  func.func @transform_5(%arg0: i32) -> (i32, i32, i32) {
    %c0_i32 = arith.constant 0 : i32
    %c0_i32_0 = arith.constant 0 : i32
    %c0_i32_1 = arith.constant 0 : i32
    return %arg0, %c0_i32, %c0_i32_0 : i32, i32, i32
  }
  func.func @transform_6(%arg0: i32) -> (i32, i32, i32) {
    %c0_i32 = arith.constant 0 : i32
    %c0_i32_0 = arith.constant 0 : i32
    %c0_i32_1 = arith.constant 0 : i32
    return %arg0, %c0_i32, %c0_i32_0 : i32, i32, i32
  }
  func.func @transform_7(%arg0: i32) -> (i32, i32, i32) {
    %c0_i32 = arith.constant 0 : i32
    %c0_i32_0 = arith.constant 0 : i32
    %c0_i32_1 = arith.constant 0 : i32
    return %arg0, %c0_i32, %c0_i32_0 : i32, i32, i32
  }
  func.func @transform_8(%arg0: i32) -> (i32, i32, i32) {
    %c0_i32 = arith.constant 0 : i32
    %c0_i32_0 = arith.constant 0 : i32
    %c0_i32_1 = arith.constant 0 : i32
    return %arg0, %c0_i32, %c0_i32_0 : i32, i32, i32
  }
  func.func @transform_9(%arg0: i32) -> (i32, i32, i32) {
    %c0_i32 = arith.constant 0 : i32
    %c0_i32_0 = arith.constant 0 : i32
    %c0_i32_1 = arith.constant 0 : i32
    return %arg0, %c0_i32, %c0_i32_0 : i32, i32, i32
  }
}

</mosaic_0001>

<bundles_post_ra>
// kernel: critic_forward.1
= control target key start
LH: loop header
LB: loop body
LE: loop exit
PB: predicated region body
PF: predicated region fallthrough
CT: control target
= control target key end

     0   :  { %14 = vsyncpa [#allocation3], 0  ;;  %s2772_s0 = inlined_call_operand.vmem [shape: f32[2,12], index: 0, kind: input, shape index: {}]   ;;  %s2773_s1 = inlined_call_operand.vmem [shape: f32[2,32], index: 1, kind: input, shape index: {}]   ;;  %s2774_s2 = inlined_call_operand.vmem [shape: bf16[2,12,512], index: 2, kind: input, shape index: {}]   ;;  %s2775_s3 = inlined_call_operand.vmem [shape: bf16[2,32,512], index: 3, kind: input, shape index: {}]   ;;  %s2776_s4 = inlined_call_operand.vmem [shape: f32[2,1,512], index: 4, kind: input, shape index: {}]   ;;  %s2777_s5 = inlined_call_operand.hbm [shape: bf16[2,512,512], index: 5, kind: input, shape index: {}]   ;;  %s2778_s6 = inlined_call_operand.vmem [shape: f32[2,1,512], index: 6, kind: input, shape index: {}]   ;;  %s2779_s7 = inlined_call_operand.vmem [shape: bf16[2,1,512], index: 7, kind: input, shape index: {}]   ;;  %s2780_s8 = inlined_call_operand.vmem [shape: f32[2,1,1], index: 8, kind: input, shape index: {}]   ;;  %s2781_s9 = inlined_call_operand.vmem [shape: f32[2,2,1], index: 9, kind: output, shape index: {}]  }
   0x1   :  { %16 = vsyncpa [#allocation3 + $0x1], 0  ;;  %s2445_s30 = smov 0   ;;  %s2447_s10 = smov 0  }
   0x2   :  { %s2449_s11 = smov 0   ;;  %s2451_s12 = smov 0  }
   0x3 LB: > { %s2464_s13 = sadd.s32 4294967295, %s2389_s12   ;;  %s2467_s14 = sadd.s32 1, %s2389_s12   ;;  %s2389_s12 = sphi %s2451_s12, %s2790_s12   ;;  %s2385_s11 = sphi %s2449_s11, %s2789_s11   ;;  %s2381_s10 = sphi %s2447_s10, %s2788_s10   ;;  %s2377_s30 = sphi %s2445_s30, %s2787_s30  }
   0x4   : > { %s146_s15 = ssub.s32 %s2389_s12, %s2467_s14  ;;  %s149_s16 = sadd.s32 1, %s2385_s11 }
   0x5   : > { %p147_p0 = scmp.eq.s32.totalorder %s146_s15, 0  ;;  %p156_p1 = scmp.ne.s32.totalorder %s2385_s11, %s2381_s10 }
   0x6   : > { %p157_p2 = scmp.eq.s32.totalorder %s2389_s12, 0  ;;  %p162_p3 = scmp.ne.s32.totalorder %s2381_s10, %s2377_s30 }
   0x7   : > { %s2477_s17 = scalar_select %p147_p0, %s2385_s11, %s149_s16  }
   0x8   : > { %p158_p4 = por %p157_p2, %p156_p1  ;;  %p163_p5 = scmp.eq.s32.totalorder %s2464_s13, 0 }
   0x9   : > { %p2081_p6 = scmp.lt.s32.totalorder %s2389_s12, 2  ;;  %s319_s19 = sand.u32 1, %s2385_s11  }
   0xa   : > { %p2481_p7 = por %p163_p5, %p162_p3  ;;  %s1910_s20 = sshll.u32 %s319_s19, 10 }
   0xb   : > { %s2072_s21 = sshll.u32 %s2389_s12, 14  ;;  %s323_s25 = scalar_lea.vmem [#allocation2], %s1910_s20 }
   0xc   : > { %s2783_s18 = scalar_select %p2481_p7, 1, 0 }
   0xd   : > { %s2490_s24 = scalar_lea.hbm %s2777_s5, %s2072_s21  ;;  %s330_s26 = sshll.u32 %s323_s25, 4  ;;  %s2492_s26 = int_to_ptr.vmem [resolvable:$true] %s330_s26 }
   0xe   : > { %p2494_p8 = pnand %p2081_p6, %p158_p4  ;;  %s2499_s28 = scalar_lea.sflag [#allocation3], %s319_s19 }
   0xf   : > { %s2327_s29 = scalar_lea.hbm %s2490_s24, 16384  ;;  %s2332_s16 = scalar_lea.hbm %s2777_s5, 32768 }
  0x10   : > { %p2328_p10 = scmp.ne.s32.totalorder %s2490_s24, %s2327_s29  ;;  %p2329_p11 = pneg %p2494_p8 }
  0x11   : > { %p2333_p0 = scmp.lt.s32.totalorder %s2490_s24, %s2777_s5  ;;  %p2334_p1 = scmp.lt.s32.totalorder %s2332_s16, %s2327_s29 }
  0x12   : > { %p2330_p12 = pnand %p2329_p11, %p2328_p10 }
  0x13   : > { %p2335_p2 = por %p2334_p1, %p2333_p0 }
  0x14   : > { %p2331_p13 = pneg %p2330_p12 }
  0x16   : > { %p2336_p3 = pnand %p2335_p2, %p2331_p13 }
  0x18   : > { %2339 = shalt.err (!%p2336_p3)
}
  0x19   : > { %s2340_s19 = scalar_lea.vmem %s2492_s26, 16384  ;;  %s2391_s22 = smov [#allocation2]  }
  0x1a   : > { %p2341_p4 = scmp.ne.s32.totalorder %s2492_s26, %s2340_s19  ;;  %s2345_s23 = sshll.u32 %s2391_s22, 4  ;;  %s2346_s23 = int_to_ptr.vmem [resolvable:$false] %s2345_s23 }
  0x1b   : > { %s2347_s25 = scalar_lea.vmem %s2346_s23, 32768  ;;  %p2348_p10 = scmp.lt.s32.totalorder %s2492_s26, %s2346_s23 }
  0x1c   : > { %p2343_p5 = pnand %p2341_p4, %p2329_p11  ;;  %p2349_p12 = scmp.lt.s32.totalorder %s2347_s25, %s2340_s19 }
  0x1e   : > { %p2344_p6 = pneg %p2343_p5  ;;  %p2350_p9 = por %p2349_p12, %p2348_p10 }
  0x20   : > { %p2351_p7 = pnand %p2350_p9, %p2344_p6 }
  0x22   : > { %2354 = shalt.err (!%p2351_p7)
}
  0x23   : > { %s2392_s29 = smov 256   ;;  %s2393_s30 = smov 16  }
  0x24   : > { %2080 = dma.hbm_to_vmem [thread:$0]  (!%p2494_p8), %s2490_s24, 16384, %s2492_s26, %s2499_s28, %s2392_s29, %s2392_s29, %s2393_s30  }
  0x25   : > { %p358_p11 = scmp.lt.s32.totalorder %s2389_s12, 3  ;;  %p2785_p13 = scmp.ge.s32.totalorder %s2389_s12, 1 }
  0x27   : > { %p359_p0 = pnand %p2785_p13, %p358_p11 }
  0x28   : > { %s364_s15 = sand.u32 (!%p359_p0), 1, %s2381_s10   ;;  %p2786_p7 = scmp.ne.s32.totalorder (!%p359_p0), %s2783_s18, 0 }
  0x29   : > { %362 = sbr.rel (%p359_p0) target bundleno = 686 (0x2ae), region = 56  ;;  %s1914_s16 = sshll.u32 (!%p359_p0), %s364_s15, 10 }
  0x2a   : > { %s365_s20 = scalar_lea.sflag (!%p359_p0), [#allocation3], %s364_s15  ;;  %s2524_s21 = scalar_lea.vmem (!%p359_p0), [#allocation2], %s1914_s16 }
  0x2e   : > { %2372 = dma.done.wait (%p2786_p7), %s365_s20, 16384  }
  0x2f   : > { %2374 = vsyncadd (%p2786_p7), %s365_s20, 4294950912  ;;  %p427_p9 = scmp.lt.s32.totalorder %s2464_s13, 1  ;;  %v2394_v0 = vmov 0   ;;  %vm513_vm0 = vcmask 261120   ;;  %v459_v9 = vld [vmem:[%s2773_s1] sm:$0x3] }
  0x30   : > { %549 = vmatprep.mubr.bf16.mxu0 %v2394_v0  ;;  %590 = vmatprep.mubr.bf16.mxu1 %v2394_v0  ;;  %vm619_vm1 = vcmask 1045504   ;;  %v460_v11 = vpack.c.bf16 %v459_v9, %v459_v9  ;;  %v2137_v17 = vld [vmem:[%s2524_s21 + $0xe4] ss:$16 sps:$4 sm:$0xff]   ;;  %v457_v19 = vld [vmem:[%s2772_s0] sm:$0x3]  ;;  %vm615_vm2 = vcmask 97280  }
  0x31   : > { %s2792_s13 = smov (!%p427_p9, %s2464_s13), 1  ;;  %v2140_v18 = vld [vmem:[%s2524_s21 + $0x2e4] ss:$16 sps:$4 sm:$0xff]   ;;  %v458_v20 = vpack.c.bf16 %v457_v19, %v457_v19  ;;  %v2135_v21 = vld [vmem:[%s2524_s21 + $0xe0] ss:$16 sps:$4 sm:$0xff]   ;;  %vm1753_vm3 = vcmask 1041408  }
  0x32   : > { %s2074_s12 = sshll.u32 %s2792_s13, 6  ;;  %s2073_s28 = sshll.u32 %s2792_s13, 5  ;;  %v2138_v22 = vld [vmem:[%s2524_s21 + $0x2e0] ss:$16 sps:$4 sm:$0xff]   ;;  %v2143_v23 = vld [vmem:[%s2524_s21 + $0xc4] ss:$16 sps:$4 sm:$0xff]  }
  0x33   : > { %s436_s27 = scalar_lea.vmem %s2775_s3, %s2074_s12  ;;  %s431_s22 = scalar_lea.vmem %s2774_s2, %s2073_s28  ;;  %v2146_v24 = vld [vmem:[%s2524_s21 + $0x2c4] ss:$16 sps:$4 sm:$0xff]   ;;  %v2141_v25 = vld [vmem:[%s2524_s21 + $0xc0] ss:$16 sps:$4 sm:$0xff]   ;;  %v2233_v19 = vld [vmem:[%s2524_s21 + $0xec] ss:$16 sps:$4 sm:$0xff]  }
  0x34   : > { %v2117_v1 = vld [vmem:[%s436_s27 + $0x24] ss:$16 sps:$4 sm:$0xff]   ;;  %v2119_v2 = vld [vmem:[%s436_s27 + $0x2c] ss:$16 sps:$4 sm:$0xff]   ;;  %v2121_v3 = vld [vmem:[%s436_s27 + $0x20] ss:$16 sps:$4 sm:$0xff]   ;;  %s451_s23 = scalar_lea.vmem %s2780_s8, %s2792_s13 }
  0x35   : > { %529 = vmatprep.subr.bf16.mxu0 %v2117_v1  ;;  %v2122_v4 = vld [vmem:[%s436_s27 + $0x28] ss:$16 sps:$4 sm:$0xff]   ;;  %570 = vmatprep.subr.bf16.mxu1 %v2119_v2  ;;  %v2123_v5 = vld [vmem:[%s436_s27 + $0x4] ss:$16 sps:$4 sm:$0xff]   ;;  %v2125_v6 = vld [vmem:[%s436_s27 + $0xc] ss:$16 sps:$4 sm:$0xff]  }
  0x36   : > { %530 = vmatpush1.bf16.msra.mxu0 %v2121_v3  ;;  %571 = vmatpush1.bf16.msra.mxu1 %v2122_v4  ;;  %v2127_v7 = vld [vmem:[%s436_s27] ss:$16 sps:$4 sm:$0xff]   ;;  %v2128_v8 = vld [vmem:[%s436_s27 + $0x8] ss:$16 sps:$4 sm:$0xff]   ;;  %v2149_v27 = vld [vmem:[%s2524_s21 + $0xa4] ss:$16 sps:$4 sm:$0xff]  }
  0x37   : > { %531 = vmatprep.subr.bf16.mxu0 %v2123_v5  ;;  %572 = vmatprep.subr.bf16.mxu1 %v2125_v6  ;;  %v2129_v10 = vld [vmem:[%s431_s22 + $0x4] ss:$16 sps:$4 sm:$0x3f]   ;;  %v2131_v12 = vld [vmem:[%s431_s22] ss:$16 sps:$4 sm:$0x3f]  }
  0x38   : > { %v2132_v13 = vld [vmem:[%s431_s22 + $0xc] ss:$16 sps:$4 sm:$0x3f]   ;;  %v2134_v14 = vld [vmem:[%s431_s22 + $0x8] ss:$16 sps:$4 sm:$0x3f]  }
  0x39   : > { %v621_v15 = vsel %vm619_vm1, %v2131_v12, 0  ;;  %v627_v16 = vsel %vm619_vm1, %v2134_v14, 0  ;;  %v2144_v26 = vld [vmem:[%s2524_s21 + $0x2c0] ss:$16 sps:$4 sm:$0xff]   ;;  %v2152_v28 = vld [vmem:[%s2524_s21 + $0x2a4] ss:$16 sps:$4 sm:$0xff]  }
  0x3a   : > { %532 = vmatpush1.bf16.msra.mxu0 %v2127_v7  ;;  %573 = vmatpush1.bf16.msra.mxu1 %v2128_v8  ;;  %v2147_v29 = vld [vmem:[%s2524_s21 + $0xa0] ss:$16 sps:$4 sm:$0xff]   ;;  %v2155_v31 = vld [vmem:[%s2524_s21 + $0x84] ss:$16 sps:$4 sm:$0xff]   ;;  %s2617_s15 = sshll.u32 %s2792_s13, 2  ;;  %s1922_s25 = sshll.u32 %s2792_s13, 1 }
  0x3b   : > { %1937 = vmatprep.subr.msk.bf16.mxu0 %vm619_vm1, %v2129_v10  ;;  %1939 = vmatprep.subr.msk.bf16.mxu1 %vm619_vm1, %v2132_v13  ;;  %v2150_v30 = vld [vmem:[%s2524_s21 + $0x2a0] ss:$16 sps:$4 sm:$0xff]   ;;  %v2158_v32 = vld [vmem:[%s2524_s21 + $0x284] ss:$16 sps:$4 sm:$0xff]   ;;  %s440_s12 = scalar_lea.vmem %s2776_s4, %s2617_s15  ;;  %s448_s18 = scalar_lea.vmem %s2779_s7, %s2617_s15  ;;  %vm1771_vm4 = vcmask 1024  }
  0x3c   : > { %v2153_v33 = vld [vmem:[%s2524_s21 + $0x80] ss:$16 sps:$4 sm:$0xff]   ;;  %v2161_v35 = vld [vmem:[%s2524_s21 + $0x64] ss:$16 sps:$4 sm:$0xff]  }
  0x3d   : > { %1931 = vmatmul.mubr.msk.bf16.vlgmr.msra.gmra.mxu0 %vm513_vm0, %v460_v11  ;;  %1932 = vmatmul.mubr.msk.bf16.vlgmr.msra.gmra.mxu1 %vm513_vm0, %v460_v11  ;;  %v2156_v34 = vld [vmem:[%s2524_s21 + $0x280] ss:$16 sps:$4 sm:$0xff]   ;;  %v2164_v36 = vld [vmem:[%s2524_s21 + $0x264] ss:$16 sps:$4 sm:$0xff]  }
  0x3e   : > { %647 = vmatpush1.bf16.msra.mxu0 %v621_v15  ;;  %688 = vmatpush1.bf16.msra.mxu1 %v627_v16  ;;  %v2159_v37 = vld [vmem:[%s2524_s21 + $0x60] ss:$16 sps:$4 sm:$0xff]   ;;  %v2167_v39 = vld [vmem:[%s2524_s21 + $0x44] ss:$16 sps:$4 sm:$0xff]  }
  0x3f   : > { %664 = vmatprep.mubr.bf16.mxu0 %v2394_v0  ;;  %705 = vmatprep.mubr.bf16.mxu1 %v2394_v0  ;;  %v2162_v38 = vld [vmem:[%s2524_s21 + $0x260] ss:$16 sps:$4 sm:$0xff]   ;;  %v2170_v40 = vld [vmem:[%s2524_s21 + $0x244] ss:$16 sps:$4 sm:$0xff]  }
  0x40   : > { %1538 = vmatprep.subr.bf16.mxu0 %v2137_v17  ;;  %1579 = vmatprep.subr.bf16.mxu1 %v2140_v18  ;;  %v2165_v41 = vld [vmem:[%s2524_s21 + $0x40] ss:$16 sps:$4 sm:$0xff]   ;;  %v2173_v43 = vld [vmem:[%s2524_s21 + $0x24] ss:$16 sps:$4 sm:$0xff]  }
  0x41   : > { %v2168_v42 = vld [vmem:[%s2524_s21 + $0x240] ss:$16 sps:$4 sm:$0xff]   ;;  %v2176_v44 = vld [vmem:[%s2524_s21 + $0x224] ss:$16 sps:$4 sm:$0xff]  }
  0x42   : > { %v2171_v45 = vld [vmem:[%s2524_s21 + $0x20] ss:$16 sps:$4 sm:$0xff]   ;;  %v2179_v47 = vld [vmem:[%s2524_s21 + $0x4] ss:$16 sps:$4 sm:$0xff]  }
  0x43   : > { %v2174_v46 = vld [vmem:[%s2524_s21 + $0x220] ss:$16 sps:$4 sm:$0xff]   ;;  %v2182_v48 = vld [vmem:[%s2524_s21 + $0x204] ss:$16 sps:$4 sm:$0xff]  }
  0x44   : > { %v2177_v49 = vld [vmem:[%s2524_s21] ss:$16 sps:$4 sm:$0xff]   ;;  %v2185_v51 = vld [vmem:[%s2524_s21 + $0x1e4] ss:$16 sps:$4 sm:$0xff]  }
  0x45   : > { %1938 = vmatmul.mubr.msk.bf16.vlgmr.msra.gmra.mxu0 %vm615_vm2, %v458_v20  ;;  %1940 = vmatmul.mubr.msk.bf16.vlgmr.msra.gmra.mxu1 %vm615_vm2, %v458_v20  ;;  %v2180_v50 = vld [vmem:[%s2524_s21 + $0x200] ss:$16 sps:$4 sm:$0xff]   ;;  %v2188_v52 = vld [vmem:[%s2524_s21 + $0x3e4] ss:$16 sps:$4 sm:$0xff]   ;;  %v2236_v20 = vld [vmem:[%s2524_s21 + $0x2ec] ss:$16 sps:$4 sm:$0xff]  }
  0x46   : > { %1539 = vmatpush1.bf16.msra.mxu0 %v2135_v21  ;;  %1580 = vmatpush1.bf16.msra.mxu1 %v2138_v22  ;;  %v2183_v53 = vld [vmem:[%s2524_s21 + $0x1e0] ss:$16 sps:$4 sm:$0xff]   ;;  %v2191_v55 = vld [vmem:[%s2524_s21 + $0x1c4] ss:$16 sps:$4 sm:$0xff]   ;;  %v716_v21 = vlaneseq }
  0x47   : > { %1540 = vmatprep.subr.bf16.mxu0 %v2143_v23  ;;  %1581 = vmatprep.subr.bf16.mxu1 %v2146_v24  ;;  %v2186_v54 = vld [vmem:[%s2524_s21 + $0x3e0] ss:$16 sps:$4 sm:$0xff]   ;;  %v2194_v56 = vld [vmem:[%s2524_s21 + $0x3c4] ss:$16 sps:$4 sm:$0xff]  }
  0x48   : > { %v2189_v57 = vld [vmem:[%s2524_s21 + $0x1c0] ss:$16 sps:$4 sm:$0xff]   ;;  %v2197_v59 = vld [vmem:[%s2524_s21 + $0x1a4] ss:$16 sps:$4 sm:$0xff]   ;;  %v2619_v22 = vshrl.u32 %v716_v21, 7 }
  0x49   : > { %v2192_v58 = vld [vmem:[%s2524_s21 + $0x3c0] ss:$16 sps:$4 sm:$0xff]   ;;  %v2200_v60 = vld [vmem:[%s2524_s21 + $0x3a4] ss:$16 sps:$4 sm:$0xff]   ;;  %v2264_v21 = vld [vmem:[%s2524_s21 + $0x248] ss:$16 sps:$4 sm:$0xff]  }
  0x4a   : > { %1541 = vmatpush1.bf16.msra.mxu0 %v2141_v25  ;;  %1582 = vmatpush1.bf16.msra.mxu1 %v2144_v26  ;;  %v2195_v61 = vld [vmem:[%s2524_s21 + $0x1a0] ss:$16 sps:$4 sm:$0xff]   ;;  %v2203_v63 = vld [vmem:[%s2524_s21 + $0x184] ss:$16 sps:$4 sm:$0xff]  }
  0x4b   : > { %1542 = vmatprep.subr.bf16.mxu0 %v2149_v27  ;;  %1583 = vmatprep.subr.bf16.mxu1 %v2152_v28  ;;  %v2198_v62 = vld [vmem:[%s2524_s21 + $0x3a0] ss:$16 sps:$4 sm:$0xff]   ;;  %v2206_v0 = vld [vmem:[%s2524_s21 + $0x384] ss:$16 sps:$4 sm:$0xff]   ;;  %v2626_v27 = vsub.s32 0, %v2619_v22  ;;  %v2629_v28 = vsub.s32 2, %v2619_v22 }
  0x4c   : > { %v2201_v1 = vld [vmem:[%s2524_s21 + $0x180] ss:$16 sps:$4 sm:$0xff]   ;;  %v2209_v3 = vld [vmem:[%s2524_s21 + $0x164] ss:$16 sps:$4 sm:$0xff]  }
  0x4d   : > { %v2204_v2 = vld [vmem:[%s2524_s21 + $0x380] ss:$16 sps:$4 sm:$0xff]   ;;  %v2212_v4 = vld [vmem:[%s2524_s21 + $0x364] ss:$16 sps:$4 sm:$0xff]  }
  0x4e   : > { %1543 = vmatpush1.bf16.msra.mxu0 %v2147_v29  ;;  %1584 = vmatpush1.bf16.msra.mxu1 %v2150_v30  ;;  %v2207_v5 = vld [vmem:[%s2524_s21 + $0x160] ss:$16 sps:$4 sm:$0xff]   ;;  %v2215_v7 = vld [vmem:[%s2524_s21 + $0x144] ss:$16 sps:$4 sm:$0xff]  }
  0x4f   : > { %1544 = vmatprep.subr.bf16.mxu0 %v2155_v31  ;;  %1585 = vmatprep.subr.bf16.mxu1 %v2158_v32  ;;  %v2210_v6 = vld [vmem:[%s2524_s21 + $0x360] ss:$16 sps:$4 sm:$0xff]   ;;  %v2218_v8 = vld [vmem:[%s2524_s21 + $0x344] ss:$16 sps:$4 sm:$0xff]   ;;  %v722_v32 = vsub.s32 1, %v2619_v22 }
  0x50   : > { %v2213_v9 = vld [vmem:[%s2524_s21 + $0x140] ss:$16 sps:$4 sm:$0xff]   ;;  %v2221_v11 = vld [vmem:[%s2524_s21 + $0x124] ss:$16 sps:$4 sm:$0xff]  }
  0x51   : > { %v2216_v10 = vld [vmem:[%s2524_s21 + $0x340] ss:$16 sps:$4 sm:$0xff]   ;;  %v2224_v12 = vld [vmem:[%s2524_s21 + $0x324] ss:$16 sps:$4 sm:$0xff]  }
  0x52   : > { %1545 = vmatpush1.bf16.msra.mxu0 %v2153_v33  ;;  %1586 = vmatpush1.bf16.msra.mxu1 %v2156_v34  ;;  %v2219_v13 = vld [vmem:[%s2524_s21 + $0x120] ss:$16 sps:$4 sm:$0xff]   ;;  %v2227_v15 = vld [vmem:[%s2524_s21 + $0x104] ss:$16 sps:$4 sm:$0xff]   ;;  %v730_v33 = vsub.s32 3, %v2619_v22 }
  0x53   : > { %1546 = vmatprep.subr.bf16.mxu0 %v2161_v35  ;;  %1587 = vmatprep.subr.bf16.mxu1 %v2164_v36  ;;  %v2222_v14 = vld [vmem:[%s2524_s21 + $0x320] ss:$16 sps:$4 sm:$0xff]   ;;  %v2230_v16 = vld [vmem:[%s2524_s21 + $0x304] ss:$16 sps:$4 sm:$0xff]  }
  0x54   : > { %v2225_v17 = vld [vmem:[%s2524_s21 + $0x100] ss:$16 sps:$4 sm:$0xff]  }
  0x55   : > { %v2228_v18 = vld [vmem:[%s2524_s21 + $0x300] ss:$16 sps:$4 sm:$0xff]  }
  0x56   : > { %1547 = vmatpush1.bf16.msra.mxu0 %v2159_v37  ;;  %1588 = vmatpush1.bf16.msra.mxu1 %v2162_v38  ;;  %v714_v31 = vld [vmem:[%s440_s12] sm:$0xf] }
  0x57   : > { %1548 = vmatprep.subr.bf16.mxu0 %v2167_v39  ;;  %1589 = vmatprep.subr.bf16.mxu1 %v2170_v40  ;;  %v719_v36 = vrot.slane %v714_v31, %v2626_v27  ;;  %v727_v37 = vrot.slane %v714_v31, %v2629_v28 }
  0x5a   : > { %1549 = vmatpush1.bf16.msra.mxu0 %v2165_v41  ;;  %1590 = vmatpush1.bf16.msra.mxu1 %v2168_v42  ;;  %v723_v42 = vrot.slane %v714_v31, %v722_v32 }
  0x5b   : > { %1550 = vmatprep.subr.bf16.mxu0 %v2173_v43  ;;  %1591 = vmatprep.subr.bf16.mxu1 %v2176_v44  ;;  %v731_v43 = vrot.slane %v714_v31, %v730_v33  ;;  %v2273_v31 = vld [vmem:[%s2524_s21 + $0x8] ss:$16 sps:$4 sm:$0xff]  }
  0x5e   : > { %1551 = vmatpush1.bf16.msra.mxu0 %v2171_v45  ;;  %1592 = vmatpush1.bf16.msra.mxu1 %v2174_v46 }
  0x5f   : > { %1552 = vmatprep.subr.bf16.mxu0 %v2179_v47  ;;  %1593 = vmatprep.subr.bf16.mxu1 %v2182_v48 }
  0x62   : > { %1553 = vmatpush1.bf16.msra.mxu0 %v2177_v49  ;;  %1594 = vmatpush1.bf16.msra.mxu1 %v2180_v50 }
  0x63   : > { %1554 = vmatprep.subr.bf16.mxu0 %v2185_v51  ;;  %1595 = vmatprep.subr.bf16.mxu1 %v2188_v52 }
  0x66   : > { %1555 = vmatpush2.bf16.msra.mxu0 %v2183_v53  ;;  %1596 = vmatpush2.bf16.msra.mxu1 %v2186_v54 }
  0x67   : > { %1556 = vmatprep.subr.bf16.mxu0 %v2191_v55  ;;  %1597 = vmatprep.subr.bf16.mxu1 %v2194_v56 }
  0x6a   : > { %1557 = vmatpush2.bf16.msra.mxu0 %v2189_v57  ;;  %1598 = vmatpush2.bf16.msra.mxu1 %v2192_v58 }
  0x6b   : > { %1558 = vmatprep.subr.bf16.mxu0 %v2197_v59  ;;  %1599 = vmatprep.subr.bf16.mxu1 %v2200_v60 }
  0x6e   : > { %1559 = vmatpush2.bf16.msra.mxu0 %v2195_v61  ;;  %1600 = vmatpush2.bf16.msra.mxu1 %v2198_v62  ;;  %v2231_v62 = vld [vmem:[%s2524_s21 + $0xe8] ss:$16 sps:$4 sm:$0xff]  }
  0x6f   : > { %1560 = vmatprep.subr.bf16.mxu0 %v2203_v63  ;;  %1601 = vmatprep.subr.bf16.mxu1 %v2206_v0  ;;  %v2234_v63 = vld [vmem:[%s2524_s21 + $0x2e8] ss:$16 sps:$4 sm:$0xff]  }
  0x72   : > { %1561 = vmatpush2.bf16.msra.mxu0 %v2201_v1  ;;  %1602 = vmatpush2.bf16.msra.mxu1 %v2204_v2  ;;  %v2239_v2 = vld [vmem:[%s2524_s21 + $0xcc] ss:$16 sps:$4 sm:$0xff]  }
  0x73   : > { %1562 = vmatprep.subr.bf16.mxu0 %v2209_v3  ;;  %1603 = vmatprep.subr.bf16.mxu1 %v2212_v4  ;;  %v2242_v3 = vld [vmem:[%s2524_s21 + $0x2cc] ss:$16 sps:$4 sm:$0xff]   ;;  %v2237_v4 = vld [vmem:[%s2524_s21 + $0xc8] ss:$16 sps:$4 sm:$0xff]  }
  0x76   : > { %1563 = vmatpush2.bf16.msra.mxu0 %v2207_v5  ;;  %1604 = vmatpush2.bf16.msra.mxu1 %v2210_v6  ;;  %v2240_v5 = vld [vmem:[%s2524_s21 + $0x2c8] ss:$16 sps:$4 sm:$0xff]   ;;  %v2245_v6 = vld [vmem:[%s2524_s21 + $0xac] ss:$16 sps:$4 sm:$0xff]  }
  0x77   : > { %1564 = vmatprep.subr.bf16.mxu0 %v2215_v7  ;;  %1605 = vmatprep.subr.bf16.mxu1 %v2218_v8  ;;  %v2248_v7 = vld [vmem:[%s2524_s21 + $0x2ac] ss:$16 sps:$4 sm:$0xff]   ;;  %v2243_v8 = vld [vmem:[%s2524_s21 + $0xa8] ss:$16 sps:$4 sm:$0xff]  }
  0x7a   : > { %1565 = vmatpush2.bf16.msra.mxu0 %v2213_v9  ;;  %1606 = vmatpush2.bf16.msra.mxu1 %v2216_v10  ;;  %v2246_v9 = vld [vmem:[%s2524_s21 + $0x2a8] ss:$16 sps:$4 sm:$0xff]   ;;  %v2251_v10 = vld [vmem:[%s2524_s21 + $0x8c] ss:$16 sps:$4 sm:$0xff]  }
  0x7b   : > { %1566 = vmatprep.subr.bf16.mxu0 %v2221_v11  ;;  %1607 = vmatprep.subr.bf16.mxu1 %v2224_v12  ;;  %v2254_v11 = vld [vmem:[%s2524_s21 + $0x28c] ss:$16 sps:$4 sm:$0xff]   ;;  %v2249_v12 = vld [vmem:[%s2524_s21 + $0x88] ss:$16 sps:$4 sm:$0xff]  }
  0x7e   : > { %1567 = vmatpush2.bf16.msra.mxu0 %v2219_v13  ;;  %1608 = vmatpush2.bf16.msra.mxu1 %v2222_v14  ;;  %v2252_v13 = vld [vmem:[%s2524_s21 + $0x288] ss:$16 sps:$4 sm:$0xff]   ;;  %v2257_v14 = vld [vmem:[%s2524_s21 + $0x6c] ss:$16 sps:$4 sm:$0xff]  }
  0x7f   : > { %1568 = vmatprep.subr.bf16.mxu0 %v2227_v15  ;;  %1609 = vmatprep.subr.bf16.mxu1 %v2230_v16  ;;  %v2260_v15 = vld [vmem:[%s2524_s21 + $0x26c] ss:$16 sps:$4 sm:$0xff]   ;;  %v2255_v16 = vld [vmem:[%s2524_s21 + $0x68] ss:$16 sps:$4 sm:$0xff]  }
  0x82   : > { %1569 = vmatpush2.bf16.msra.mxu0 %v2225_v17  ;;  %1610 = vmatpush2.bf16.msra.mxu1 %v2228_v18  ;;  %v2258_v17 = vld [vmem:[%s2524_s21 + $0x268] ss:$16 sps:$4 sm:$0xff]   ;;  %v2263_v18 = vld [vmem:[%s2524_s21 + $0x4c] ss:$16 sps:$4 sm:$0xff]  }
  0x83   : > { %1620 = vmatprep.subr.bf16.mxu0 %v2233_v19  ;;  %1661 = vmatprep.subr.bf16.mxu1 %v2236_v20  ;;  %v2266_v19 = vld [vmem:[%s2524_s21 + $0x24c] ss:$16 sps:$4 sm:$0xff]   ;;  %v2261_v20 = vld [vmem:[%s2524_s21 + $0x48] ss:$16 sps:$4 sm:$0xff]  }
  0xfd   : > { %v551_v23 = vpop.f32.mrf.mxu0  ;;  %v592_v24 = vpop.f32.mrf.mxu1 }
  0xff   : > { %v553_v25 = vpop.f32.mrf.mxu0  ;;  %v594_v26 = vpop.f32.mrf.mxu1 }
 0x101   : > { %v555_v29 = vpop.f32.mrf.mxu0  ;;  %v596_v30 = vpop.f32.mrf.mxu1 }
 0x102   : > { %v2275_v29 = vld [vmem:[%s2524_s21 + $0xc] ss:$16 sps:$4 sm:$0xff]  }
 0x103   : > { %v556_v34 = vpop.f32.mrf.mxu0  ;;  %v597_v35 = vpop.f32.mrf.mxu1  ;;  %v2278_v30 = vld [vmem:[%s2524_s21 + $0x20c] ss:$16 sps:$4 sm:$0xff]  }
 0x104   : > { %v2276_v34 = vld [vmem:[%s2524_s21 + $0x208] ss:$16 sps:$4 sm:$0xff]   ;;  %v2281_v35 = vld [vmem:[%s2524_s21 + $0x1ec] ss:$16 sps:$4 sm:$0xff]  }
 0x105   : > { %v666_v38 = vpop.f32.mrf.mxu0  ;;  %v707_v39 = vpop.f32.mrf.mxu1 }
 0x106   : > { %v667_v40 = vadd.f32 %v666_v38, %v551_v23  ;;  %v708_v41 = vadd.f32 %v707_v39, %v592_v24  ;;  %v2269_v23 = vld [vmem:[%s2524_s21 + $0x2c] ss:$16 sps:$4 sm:$0xff]   ;;  %v2282_v38 = vld [vmem:[%s2524_s21 + $0x3e8] ss:$16 sps:$4 sm:$0xff]  }
 0x107   : > { %v668_v44 = vpop.f32.mrf.mxu0  ;;  %v709_v45 = vpop.f32.mrf.mxu1  ;;  %v2272_v24 = vld [vmem:[%s2524_s21 + $0x22c] ss:$16 sps:$4 sm:$0xff]  }
 0x108   : > { %v736_v46 = vadd.f32 %v719_v36, %v667_v40  ;;  %v738_v47 = vadd.f32 %v727_v37, %v708_v41  ;;  %v669_v48 = vadd.f32 %v668_v44, %v553_v25  ;;  %v710_v49 = vadd.f32 %v709_v45, %v594_v26  ;;  %v2267_v25 = vld [vmem:[%s2524_s21 + $0x28] ss:$16 sps:$4 sm:$0xff]   ;;  %v2284_v36 = vld [vmem:[%s2524_s21 + $0x3ec] ss:$16 sps:$4 sm:$0xff]  }
 0x109   : > { %v670_v50 = vpop.f32.mrf.mxu0  ;;  %v711_v51 = vpop.f32.mrf.mxu1  ;;  %v2270_v26 = vld [vmem:[%s2524_s21 + $0x228] ss:$16 sps:$4 sm:$0xff]   ;;  %v2287_v39 = vld [vmem:[%s2524_s21 + $0x1cc] ss:$16 sps:$4 sm:$0xff]  }
 0x10a   : > { %v737_v52 = vadd.f32 %v723_v42, %v669_v48  ;;  %v739_v53 = vadd.f32 %v731_v43, %v710_v49  ;;  %v2639_v54 = vmax.f32 %v736_v46, 0.0  ;;  %v2641_v55 = vmax.f32 %v738_v47, 0.0  ;;  %v2279_v37 = vld [vmem:[%s2524_s21 + $0x1e8] ss:$16 sps:$4 sm:$0xff]   ;;  %v2290_v40 = vld [vmem:[%s2524_s21 + $0x3cc] ss:$16 sps:$4 sm:$0xff]  }
 0x10b   : > { %v671_v56 = vpop.f32.mrf.mxu0  ;;  %v712_v57 = vpop.f32.mrf.mxu1  ;;  %v2285_v41 = vld [vmem:[%s2524_s21 + $0x1c8] ss:$16 sps:$4 sm:$0xff]   ;;  %v2293_v43 = vld [vmem:[%s2524_s21 + $0x1ac] ss:$16 sps:$4 sm:$0xff]  }
 0x10c   : > { %v2643_v58 = vmax.f32 %v737_v52, 0.0  ;;  %v2645_v59 = vmax.f32 %v739_v53, 0.0  ;;  %v2655_v0 = vpack.c.bf16 %v2639_v54, %v2639_v54  ;;  %v2659_v1 = vpack.c.bf16 %v2641_v55, %v2641_v55  ;;  %v2288_v42 = vld [vmem:[%s2524_s21 + $0x3c8] ss:$16 sps:$4 sm:$0xff]   ;;  %v2296_v44 = vld [vmem:[%s2524_s21 + $0x3ac] ss:$16 sps:$4 sm:$0xff]  }
 0x10d   : > { %v2291_v45 = vld [vmem:[%s2524_s21 + $0x1a8] ss:$16 sps:$4 sm:$0xff]   ;;  %v2299_v47 = vld [vmem:[%s2524_s21 + $0x18c] ss:$16 sps:$4 sm:$0xff]  }
 0x10e   : > { %v745_v60 = vpack.c.bf16 %v2643_v58, %v2643_v58  ;;  %v747_v61 = vpack.c.bf16 %v2645_v59, %v2645_v59  ;;  %v2294_v46 = vld [vmem:[%s2524_s21 + $0x3a8] ss:$16 sps:$4 sm:$0xff]   ;;  %v2302_v48 = vld [vmem:[%s2524_s21 + $0x38c] ss:$16 sps:$4 sm:$0xff]  }
 0x10f   : > { %v2297_v49 = vld [vmem:[%s2524_s21 + $0x188] ss:$16 sps:$4 sm:$0xff]   ;;  %v2305_v51 = vld [vmem:[%s2524_s21 + $0x16c] ss:$16 sps:$4 sm:$0xff]  }
 0x110   : > { %1570 = vmatprep.mubr.bf16.mxu0 %v745_v60  ;;  %1611 = vmatprep.mubr.bf16.mxu1 %v747_v61  ;;  %v2300_v50 = vld [vmem:[%s2524_s21 + $0x388] ss:$16 sps:$4 sm:$0xff]   ;;  %v2308_v52 = vld [vmem:[%s2524_s21 + $0x36c] ss:$16 sps:$4 sm:$0xff]  }
 0x111   : > { %1571 = vmatmul.mubr.bf16.vlgmr.msra.gmra.mxu0 %v2655_v0  ;;  %1612 = vmatmul.mubr.bf16.vlgmr.msra.gmra.mxu1 %v2659_v1  ;;  %v2303_v53 = vld [vmem:[%s2524_s21 + $0x168] ss:$16 sps:$4 sm:$0xff]   ;;  %v2311_v57 = vld [vmem:[%s2524_s21 + $0x14c] ss:$16 sps:$4 sm:$0xff]  }
 0x112   : > { %1621 = vmatpush1.bf16.msra.mxu0 %v2231_v62  ;;  %1662 = vmatpush1.bf16.msra.mxu1 %v2234_v63  ;;  %v2306_v56 = vld [vmem:[%s2524_s21 + $0x368] ss:$16 sps:$4 sm:$0xff]   ;;  %v2317_v63 = vld [vmem:[%s2524_s21 + $0x12c] ss:$16 sps:$4 sm:$0xff]  }
 0x113   : > { %1652 = vmatprep.mubr.bf16.mxu0 %v745_v60  ;;  %1693 = vmatprep.mubr.bf16.mxu1 %v747_v61  ;;  %v2314_v60 = vld [vmem:[%s2524_s21 + $0x34c] ss:$16 sps:$4 sm:$0xff]   ;;  %v2309_v61 = vld [vmem:[%s2524_s21 + $0x148] ss:$16 sps:$4 sm:$0xff]  }
 0x114   : > { %1622 = vmatprep.subr.bf16.mxu0 %v2239_v2  ;;  %1663 = vmatprep.subr.bf16.mxu1 %v2242_v3  ;;  %v2312_v62 = vld [vmem:[%s2524_s21 + $0x348] ss:$16 sps:$4 sm:$0xff]   ;;  %v2320_v2 = vld [vmem:[%s2524_s21 + $0x32c] ss:$16 sps:$4 sm:$0xff]  }
 0x115   : > { %v2315_v3 = vld [vmem:[%s2524_s21 + $0x128] ss:$16 sps:$4 sm:$0xff]  }
 0x116   : > { %1623 = vmatpush1.bf16.msra.mxu0 %v2237_v4  ;;  %1664 = vmatpush1.bf16.msra.mxu1 %v2240_v5  ;;  %v2318_v4 = vld [vmem:[%s2524_s21 + $0x328] ss:$16 sps:$4 sm:$0xff]   ;;  %v2323_v5 = vld [vmem:[%s2524_s21 + $0x10c] ss:$16 sps:$4 sm:$0xff]  }
 0x117   : > { %1624 = vmatprep.subr.bf16.mxu0 %v2245_v6  ;;  %1665 = vmatprep.subr.bf16.mxu1 %v2248_v7  ;;  %v2326_v6 = vld [vmem:[%s2524_s21 + $0x30c] ss:$16 sps:$4 sm:$0xff]   ;;  %v2321_v7 = vld [vmem:[%s2524_s21 + $0x108] ss:$16 sps:$4 sm:$0xff]  }
 0x11a   : > { %1625 = vmatpush1.bf16.msra.mxu0 %v2243_v8  ;;  %1666 = vmatpush1.bf16.msra.mxu1 %v2246_v9  ;;  %v2324_v8 = vld [vmem:[%s2524_s21 + $0x308] ss:$16 sps:$4 sm:$0xff]   ;;  %s444_s21 = scalar_lea.vmem %s2778_s6, %s2617_s15  ;;  %s455_s15 = scalar_lea.vmem %s2781_s9, %s1922_s25 }
 0x11b   : > { %1626 = vmatprep.subr.bf16.mxu0 %v2251_v10  ;;  %1667 = vmatprep.subr.bf16.mxu1 %v2254_v11 }
 0x11e   : > { %1627 = vmatpush1.bf16.msra.mxu0 %v2249_v12  ;;  %1668 = vmatpush1.bf16.msra.mxu1 %v2252_v13 }
 0x11f   : > { %1628 = vmatprep.subr.bf16.mxu0 %v2257_v14  ;;  %1669 = vmatprep.subr.bf16.mxu1 %v2260_v15 }
 0x122   : > { %1629 = vmatpush1.bf16.msra.mxu0 %v2255_v16  ;;  %1670 = vmatpush1.bf16.msra.mxu1 %v2258_v17  ;;  %v876_v17 = vld [vmem:[%s444_s21] sm:$0xf] }
 0x123   : > { %1630 = vmatprep.subr.bf16.mxu0 %v2263_v18  ;;  %1671 = vmatprep.subr.bf16.mxu1 %v2266_v19  ;;  %v885_v18 = vrot.slane %v876_v17, %v722_v32  ;;  %v889_v32 = vrot.slane %v876_v17, %v2629_v28 }
 0x126   : > { %1631 = vmatpush1.bf16.msra.mxu0 %v2261_v20  ;;  %1672 = vmatpush1.bf16.msra.mxu1 %v2264_v21  ;;  %v1710_v20 = vld [vmem:[%s448_s18] sm:$0xf] }
 0x127   : > { %1632 = vmatprep.subr.bf16.mxu0 %v2269_v23  ;;  %1673 = vmatprep.subr.bf16.mxu1 %v2272_v24  ;;  %v1711_v23 = vunpack.c.l.bf16 %v1710_v20 }
 0x12a   : > { %1633 = vmatpush1.bf16.msra.mxu0 %v2267_v25  ;;  %1674 = vmatpush1.bf16.msra.mxu1 %v2270_v26  ;;  %v1720_v26 = vrot.slane %v1711_v23, %v2629_v28 }
 0x12b   : > { %1634 = vmatprep.subr.bf16.mxu0 %v2275_v29  ;;  %1675 = vmatprep.subr.bf16.mxu1 %v2278_v30  ;;  %v1716_v30 = vrot.slane %v1711_v23, %v2626_v27 }
 0x12e   : > { %1635 = vmatpush1.bf16.msra.mxu0 %v2273_v31  ;;  %1676 = vmatpush1.bf16.msra.mxu1 %v2276_v34  ;;  %v1723_v31 = vsub.s32 4, %v2619_v22 }
 0x12f   : > { %1636 = vmatprep.subr.bf16.mxu0 %v2281_v35  ;;  %1677 = vmatprep.subr.bf16.mxu1 %v2284_v36  ;;  %v1740_v35 = vrot.slane %v1720_v26, %v2626_v27  ;;  %v893_v36 = vrot.slane %v876_v17, %v730_v33 }
 0x132   : > { %1637 = vmatpush2.bf16.msra.mxu0 %v2279_v37  ;;  %1678 = vmatpush2.bf16.msra.mxu1 %v2282_v38  ;;  %v1727_v37 = vsub.s32 6, %v2619_v22 }
 0x133   : > { %1638 = vmatprep.subr.bf16.mxu0 %v2287_v39  ;;  %1679 = vmatprep.subr.bf16.mxu1 %v2290_v40 }
 0x136   : > { %1639 = vmatpush2.bf16.msra.mxu0 %v2285_v41  ;;  %1680 = vmatpush2.bf16.msra.mxu1 %v2288_v42  ;;  %v1736_v41 = vrot.slane %v1716_v30, %v2626_v27 }
 0x137   : > { %1640 = vmatprep.subr.bf16.mxu0 %v2293_v43  ;;  %1681 = vmatprep.subr.bf16.mxu1 %v2296_v44  ;;  %v1724_v43 = vrot.slane %v1711_v23, %v1723_v31 }
 0x139   : > { %v1744_v22 = vrot.slane %v1724_v43, %v2626_v27 }
 0x13a   : > { %1641 = vmatpush2.bf16.msra.mxu0 %v2291_v45  ;;  %1682 = vmatpush2.bf16.msra.mxu1 %v2294_v46 }
 0x13b   : > { %1642 = vmatprep.subr.bf16.mxu0 %v2299_v47  ;;  %1683 = vmatprep.subr.bf16.mxu1 %v2302_v48  ;;  %v1728_v47 = vrot.slane %v1711_v23, %v1727_v37 }
 0x13e   : > { %1643 = vmatpush2.bf16.msra.mxu0 %v2297_v49  ;;  %1684 = vmatpush2.bf16.msra.mxu1 %v2300_v50 }
 0x13f   : > { %1644 = vmatprep.subr.bf16.mxu0 %v2305_v51  ;;  %1685 = vmatprep.subr.bf16.mxu1 %v2308_v52 }
 0x142   : > { %1645 = vmatpush2.bf16.msra.mxu0 %v2303_v53  ;;  %1686 = vmatpush2.bf16.msra.mxu1 %v2306_v56 }
 0x143   : > { %1646 = vmatprep.subr.bf16.mxu0 %v2311_v57  ;;  %1687 = vmatprep.subr.bf16.mxu1 %v2314_v60  ;;  %v1748_v57 = vrot.slane %v1728_v47, %v2626_v27 }
 0x146   : > { %1647 = vmatpush2.bf16.msra.mxu0 %v2309_v61  ;;  %1688 = vmatpush2.bf16.msra.mxu1 %v2312_v62 }
 0x147   : > { %1648 = vmatprep.subr.bf16.mxu0 %v2317_v63  ;;  %1689 = vmatprep.subr.bf16.mxu1 %v2320_v2 }
 0x14a   : > { %1649 = vmatpush2.bf16.msra.mxu0 %v2315_v3  ;;  %1690 = vmatpush2.bf16.msra.mxu1 %v2318_v4 }
 0x14b   : > { %1650 = vmatprep.subr.bf16.mxu0 %v2323_v5  ;;  %1691 = vmatprep.subr.bf16.mxu1 %v2326_v6 }
 0x14e   : > { %1651 = vmatpush2.bf16.msra.mxu0 %v2321_v7  ;;  %1692 = vmatpush2.bf16.msra.mxu1 %v2324_v8 }
 0x151   : > { %1653 = vmatmul.mubr.bf16.vlgmr.msra.gmra.mxu0 %v2655_v0  ;;  %1694 = vmatmul.mubr.bf16.vlgmr.msra.gmra.mxu1 %v2659_v1  ;;  %v881_v0 = vrot.slane %v876_v17, %v2626_v27 }
 0x1d1   : > { %v1572_v9 = vpop.f32.mrf.mxu0  ;;  %v1613_v10 = vpop.f32.mrf.mxu1 }
 0x1d2   : > { %v1573_v19 = vadd.f32 %v1572_v9, %v881_v0 }
 0x1d3   : > { %v1574_v11 = vpop.f32.mrf.mxu0  ;;  %v1615_v12 = vpop.f32.mrf.mxu1 }
 0x1d4   : > { %v1575_v1 = vadd.f32 %v1574_v11, %v885_v18  ;;  %v1614_v24 = vadd.f32 %v1613_v10, %v1573_v19 }
 0x1d5   : > { %v1576_v13 = vpop.f32.mrf.mxu0  ;;  %v1617_v14 = vpop.f32.mrf.mxu1 }
 0x1d6   : > { %v1616_v21 = vadd.f32 %v1615_v12, %v1575_v1  ;;  %v1702_v29 = vmax.f32 %v1614_v24, 0.0 }
 0x1d7   : > { %v1577_v15 = vpop.f32.mrf.mxu0  ;;  %v1618_v16 = vpop.f32.mrf.mxu1 }
 0x1d8   : > { %v1703_v25 = vmax.f32 %v1616_v21, 0.0  ;;  %v1706_v40 = vadd.f32 %v1702_v29, %v2639_v54 }
 0x1da   : > { %v1707_v34 = vadd.f32 %v1703_v25, %v2643_v58  ;;  %v1749_v50 = vmul.f32 %v1736_v41, %v1706_v40 }
 0x1dc   : > { %v1750_v45 = vmul.f32 %v1740_v35, %v1707_v34  ;;  %v1754_v63 = vsel %vm1753_vm3, %v1749_v50, 0.0 }
 0x1de   : > { %v1755_v60 = vsel %vm1753_vm3, %v1750_v45, 0.0 }
 0x1df   : > { %v1756_v2 = vadd.f32 %v1755_v60, %v1754_v63 }
 0x211   : > { %v1654_v38 = vpop.f32.mrf.mxu0  ;;  %v1695_v39 = vpop.f32.mrf.mxu1 }
 0x212   : > { %v1655_v42 = vadd.f32 %v1654_v38, %v889_v32 }
 0x213   : > { %v1656_v28 = vpop.f32.mrf.mxu0  ;;  %v1697_v44 = vpop.f32.mrf.mxu1 }
 0x214   : > { %v1696_v46 = vadd.f32 %v1695_v39, %v1655_v42  ;;  %v1657_v58 = vadd.f32 %v1656_v28, %v893_v36 }
 0x215   : > { %v1658_v48 = vpop.f32.mrf.mxu0  ;;  %v1699_v49 = vpop.f32.mrf.mxu1 }
 0x216   : > { %v1704_v33 = vmax.f32 %v1696_v46, 0.0  ;;  %v1698_v51 = vadd.f32 %v1697_v44, %v1657_v58 }
 0x217   : > { %v1659_v52 = vpop.f32.mrf.mxu0  ;;  %v1700_v53 = vpop.f32.mrf.mxu1 }
 0x218   : > { %v1708_v54 = vadd.f32 %v1704_v33, %v2641_v55  ;;  %v1705_v56 = vmax.f32 %v1698_v51, 0.0  ;;  %v2069_v55 = vld [vmem:[%s451_s23] ss:$0 sm:$0xff] }
 0x21a   : > { %v1709_v61 = vadd.f32 %v1705_v56, %v2645_v59  ;;  %v1751_v62 = vmul.f32 %v1744_v22, %v1708_v54 }
 0x21c   : > { %v1752_v3 = vmul.f32 %v1748_v57, %v1709_v61  ;;  %v1757_v4 = vsel %vm1753_vm3, %v1751_v62, 0.0 }
 0x21d   : > { %v1758_v5 = vadd.f32 %v1757_v4, %v1756_v2 }
 0x21e   : > { %v1759_v6 = vsel %vm1753_vm3, %v1752_v3, 0.0 }
 0x21f   : > { %v1760_v7 = vadd.f32 %v1759_v6, %v1758_v5 }
 0x221   : > { %1761 = vadd.xlane.f32.xlu0 %v1760_v7 }
 0x2aa   : > { %v1762_v27 = vpop.xlane.xlu0 %1761 }
 0x2ab   : > { %v1770_v59 = vadd.f32 %v2069_v55, %v1762_v27 }
 0x2ad   : > { %1772 = vst.msk [vmem:[%s455_s15] sm:$0x3] %vm1771_vm4, %v1770_v59 }
 0x2ae PF: > { %p19_p8 = scmp.ge.s32.totalorder %s2467_s14, 4   ;;  %s2787_s30 = smov %s2381_s10 }
 0x2af   : > { %s2788_s10 = smov %s2385_s11  ;;  %s2789_s11 = smov %s2477_s17 }
 0x2b0   : > { %s2790_s12 = smov %s2467_s14  ;;  %21 = sbr.rel (!%p19_p8) target bundleno = 3 (0x3), region = 114 }
 0x2b5   :  { %1792 = vsyncpa [#allocation3], 1 }
 0x2b6   :  { %1794 = vsyncpa [#allocation3 + $0x1], 1 }

</bundles_post_ra>
